<compile_context>
chip_gen: v5e
topology: v5e:2x2
jax: 0.10.0
libtpu: 0.0.40
codegen_flags: <defaults>
</compile_context>

<pallas_src>
import jax
import jax.numpy as jnp
from jax.experimental import pallas as pl
from jax.experimental.pallas import tpu as pltpu

# ----------------------------- tuning knobs --------------------------------
_BLOCK_BYTE_BUDGET = 8 << 20    # ~8 MiB per block: <10% step overhead on v7x,
                                # ~2% on v6e, negligible on v5e.
_VMEM_LIMIT_BYTES = 48 << 20    # 2 in + 2 out 8 MiB double-buffered blocks
                                # (32 MiB) + headroom; within 64 MiB on v7x.
_MIN_SPLIT_BYTES = 4 << 20      # above this, force >=2 row tiles so v7x's two
                                # TensorCores can both stream (no-op on 1-TC chips).
_LANE_CANDIDATES = (4096, 2048, 1024, 512, 256, 128)   # wide, lane-dense first


# ---------------------------------------------------------------------------
# Zero-copy path (default): aliased no-op kernel, refs stay in HBM.
# ---------------------------------------------------------------------------
def _alias_noop_kernel(x_ref, o_ref):
    # Output HBM buffer aliases the input HBM buffer (input_output_aliases),
    # so there is nothing to do: no DMA, no vld/vst, zero HBM traffic.
    pass


def _flatten_alias(x, out_shape_2d):
    x2d = jnp.reshape(x, out_shape_2d)  # metadata-only reshape in XLA
    return pl.pallas_call(
        _alias_noop_kernel,
        out_shape=jax.ShapeDtypeStruct(out_shape_2d, x.dtype),
        in_specs=[pl.BlockSpec(memory_space=pl.ANY)],
        out_specs=pl.BlockSpec(memory_space=pl.ANY),
        input_output_aliases={0: 0},
    )(x2d)


# ---------------------------------------------------------------------------
# Materialized-copy path: tiled VMEM copy at ~HBM roofline.
# ---------------------------------------------------------------------------
def _copy_kernel(x_ref, o_ref):
    # Identity copy of the current (tile_rows, lane) block.
    o_ref[...] = x_ref[...]


def _choose_lane(total):
    """Lane (last-dim) width for the 2-D view of a `total`-element buffer."""
    # Best: wide lane AND row count a multiple of 8 (fully unmasked vld/vst).
    for cand in _LANE_CANDIDATES:
        if total % cand == 0 and (total // cand) % 8 == 0:
            return cand
    # Next: at least 8 rows.
    for cand in _LANE_CANDIDATES:
        if total % cand == 0 and (total // cand) >= 8:
            return cand
    # Anything lane-dense.
    for cand in (128, 256, 512, 1024, 2048, 4096):
        if total % cand == 0:
            return cand
    return None


def _round_up(n, m):
    return (n + m - 1) // m * m


def _choose_tile_rows(rows, lane, itemsize):
    """Row-tile size: multiple of 8, <= byte budget, prefers an even divisor
    of `rows` (no masked trailing block) and >=2 tiles for large arrays."""
    if rows <= 8:
        return rows                       # single full-extent block
    cap = max(8, (_BLOCK_BYTE_BUDGET // (lane * itemsize)) // 8 * 8)
    max_tile = min(rows // 8 * 8, cap)    # multiple of 8, <= rows, <= cap
    if max_tile < 8:
        return rows
    total_bytes = rows * lane * itemsize
    need_split = total_bytes >= _MIN_SPLIT_BYTES and rows >= 16
    # Largest multiple-of-8 tile that divides rows and respects the split.
    t = max_tile
    while t >= 8:
        if rows % t == 0 and (not need_split or rows // t >= 2):
            return t
        t -= 8
    # No even divisor: accept a masked trailing block.
    best = max_tile
    if need_split and best >= rows:
        best = _round_up(pl.cdiv(rows, 2), 8)
    return best


def _tiled_copy(x_flat):
    """Copy a flat, 128-element-aligned buffer once through VMEM."""
    total = x_flat.shape[0]
    itemsize = jnp.dtype(x_flat.dtype).itemsize
    lane = _choose_lane(total)
    rows = total // lane
    tile_rows = _choose_tile_rows(rows, lane, itemsize)
    grid = (pl.cdiv(rows, tile_rows),)
    x2d = jnp.reshape(x_flat, (rows, lane))
    out = pl.pallas_call(
        _copy_kernel,
        out_shape=jax.ShapeDtypeStruct((rows, lane), x_flat.dtype),
        grid_spec=pltpu.PrefetchScalarGridSpec(
            num_scalar_prefetch=0,
            grid=grid,
            # Tile the ROW axis only: each block is one contiguous HBM burst.
            # TODO(synk): sweep pipeline_mode=pl.Buffered(3) on v7x once
            # measurable; keep default double-buffering until then.
            in_specs=[pl.BlockSpec((tile_rows, lane), lambda i: (i, 0))],
            out_specs=pl.BlockSpec((tile_rows, lane), lambda i: (i, 0)),
        ),
        compiler_params=pltpu.CompilerParams(
            # Independent blocks: lets v7x's two TensorCores split the copy.
            dimension_semantics=("parallel",),
            vmem_limit_bytes=_VMEM_LIMIT_BYTES,
        ),
    )(x2d)
    return jnp.reshape(out, (total,))


def _pallas_flat_copy(x):
    """Copy `x` once through VMEM with Pallas kernels; return the data flat."""
    total = x.size
    if total == 0:
        return jnp.reshape(x, (0,))
    flat = jnp.reshape(x, (total,))
    rem = total % 128
    if rem == 0:
        return _tiled_copy(flat)
    # Ragged element count: bulk prefix through the tiled path, <=127-element
    # tail as one tiny block (never a huge single (1, total) VMEM block).
    main = total - rem
    tail2d = jnp.reshape(flat[main:], (1, rem))
    tail = pl.pallas_call(
        _copy_kernel,
        out_shape=jax.ShapeDtypeStruct((1, rem), x.dtype),
    )(tail2d)
    tail = jnp.reshape(tail, (rem,))
    if main == 0:
        return tail
    return jnp.concatenate([_tiled_copy(flat[:main]), tail])


# ---------------------------------------------------------------------------
# Public wrapper: torch Flatten(full).forward(x)
# ---------------------------------------------------------------------------
def flatten(x, full: bool = False, materialize: bool = False):
    """Pallas equivalent of torch Flatten(full).forward(x).

    materialize=False (default): zero-copy — the Pallas call's output aliases
    the input HBM buffer (no DMA issued).
    materialize=True: force a fresh buffer via the tiled VMEM copy kernel.
    """
    if x.ndim == 0:
        rows, cols = 1, 1
    else:
        rows = x.shape[0]
        cols = 1
        for d in x.shape[1:]:
            cols *= d
    if materialize:
        flat = _pallas_flat_copy(x)
        return flat if full else jnp.reshape(flat, (rows, cols))
    out2d = _flatten_alias(x, (rows, cols))
    return jnp.reshape(out2d, (-1,)) if full else out2d


if __name__ == "__main__":
    key = jax.random.PRNGKey(0)
    # NCHW input: batch=2, channels=4, spatial=16x16
    x = jax.random.normal(key, (2, 4, 16, 16), dtype=jnp.float32)

    # Default zero-copy (aliased) path, full=False: (2,4,16,16) -> (2,1024)
    y = jax.jit(lambda a: flatten(a, full=False))(x)
    jax.block_until_ready(y)
    assert y.shape == (2, 4 * 16 * 16)
    assert jnp.array_equal(y, jnp.reshape(x, (2, -1)))

    # Default zero-copy (aliased) path, full=True: (2,4,16,16) -> (2048,)
    y_full = jax.jit(lambda a: flatten(a, full=True))(x)
    jax.block_until_ready(y_full)
    assert y_full.shape == (2 * 4 * 16 * 16,)
    assert jnp.array_equal(y_full, jnp.reshape(x, (-1,)))

    # Materialized-copy path (tiled VMEM copy kernel).
    y_copy = flatten(x, full=False, materialize=True)
    jax.block_until_ready(y_copy)
    assert jnp.array_equal(y_copy, jnp.reshape(x, (2, -1)))

    # Ragged element count (427, not a multiple of 128): prefix + tail split.
    x_ragged = jax.random.normal(key, (7, 61), dtype=jnp.float32)
    y_ragged = flatten(x_ragged, full=True, materialize=True)
    jax.block_until_ready(y_ragged)
    assert y_ragged.shape == (7 * 61,)
    assert jnp.array_equal(y_ragged, jnp.reshape(x_ragged, (-1,)))

    print("KERNEL_OK")
</pallas_src>

<mosaic_0001>
module attributes {stable_mosaic.version = 11 : i64} {
  func.func @_alias_noop_kernel(%arg0: memref<2x1024xf32, #tpu.memory_space<any>>, %arg1: memref<2x1024xf32, #tpu.memory_space<any>>) attributes {dimension_semantics = [], scalar_prefetch = 0 : i64, scratch_operands = 0 : i64, tpu.core_type = #tpu.core_type<tc>} {
    return
  }
}

</mosaic_0001>

<bundles_post_ra>
// kernel: _lambda_.1
= control target key start
LH: loop header
LB: loop body
LE: loop exit
PB: predicated region body
PF: predicated region fallthrough
CT: control target
= control target key end

     0   :  { %s16_s0 = inlined_call_operand.hbm [shape: f32[2,1024], index: 0, kind: input, shape index: {}, may-alias: {0,1}]   ;;  %s17_s1 = inlined_call_operand.hbm [shape: f32[2,1024], index: 1, kind: output, shape index: {}, may-alias: {0,1}]  }

</bundles_post_ra>
